<compile_context>
chip_gen: v7x
topology: tpu7x:2x2x1
jax: 0.10.0
libtpu: 0.0.40
codegen_flags: <defaults>
</compile_context>

<pallas_src>
import math
from functools import partial

import jax
import jax.numpy as jnp
from jax import lax
from jax.experimental import pallas as pl
from jax.experimental.pallas import tpu as pltpu

LAYER_NORM_EPS = 1e-7  # DeBERTa-v2 default layer_norm_eps


def _erf(z):
    # Abramowitz & Stegun 7.1.26, |abs err| <= 1.5e-7 (float32-exact for our use).
    a1, a2, a3, a4, a5 = (0.254829592, -0.284496736, 1.421413741,
                          -1.453152027, 1.061405429)
    p = 0.3275911
    az = jnp.abs(z)
    t = 1.0 / (1.0 + p * az)
    poly = ((((a5 * t + a4) * t + a3) * t + a2) * t + a1) * t
    r = 1.0 - poly * jnp.exp(-az * az)
    return jnp.where(z < 0.0, -r, r)


def _gelu_exact(x):
    # HF ACT2FN["gelu"] -> erf-based (exact) GELU
    return 0.5 * x * (1.0 + _erf(x * (1.0 / math.sqrt(2.0))))


def _layer_norm(y, gamma, beta):
    # Two-pass variance (stable vs. E[y^2] - E[y]^2 at eps = 1e-7).
    mean = jnp.mean(y, axis=-1, keepdims=True)
    c = y - mean
    var = jnp.mean(c * c, axis=-1, keepdims=True)
    return c * lax.rsqrt(var + LAYER_NORM_EPS) * gamma + beta


# --------------------------------------------------------------------------- #
# Kernels
# --------------------------------------------------------------------------- #
def _ffn_resident_kernel(x_ref, w1_ref, b1_ref, w2_ref, b2_ref, g_ref, beta_ref,
                         o_ref):
    """Weights fully resident in VMEM; grid iterates over row tiles only."""
    x = x_ref[...]                                                    # (tm, H)
    h = jnp.dot(x, w1_ref[...], preferred_element_type=jnp.float32)  # (tm, I) f32
    h = _gelu_exact(h + b1_ref[...].astype(jnp.float32))
    y = jnp.dot(h.astype(w2_ref.dtype), w2_ref[...],
                preferred_element_type=jnp.float32)                  # (tm, H) f32
    y = y + b2_ref[...].astype(jnp.float32) + x.astype(jnp.float32)  # bias + residual
    y = _layer_norm(y, g_ref[...].astype(jnp.float32),
                    beta_ref[...].astype(jnp.float32))
    o_ref[...] = y.astype(o_ref.dtype)


def _ffn_stream_kernel(x_ref, w1_ref, b1_ref, w2_ref, b2_ref, g_ref, beta_ref,
                       o_ref, acc_ref):
    """Fallback: intermediate dim streamed in chunks on grid axis 1 (reduction)."""
    k = pl.program_id(1)
    x = x_ref[...]                                                    # (tm, H)

    @pl.when(k == 0)
    def _init():
        # Seed accumulator with residual + output bias -> epilogue is just LN.
        acc_ref[...] = x.astype(jnp.float32) + b2_ref[...].astype(jnp.float32)

    h = jnp.dot(x, w1_ref[...], preferred_element_type=jnp.float32)  # (tm, tc) f32
    h = _gelu_exact(h + b1_ref[...].astype(jnp.float32))
    acc_ref[...] += jnp.dot(h.astype(w2_ref.dtype), w2_ref[...],
                            preferred_element_type=jnp.float32)      # (tm, H) f32

    @pl.when(k == pl.num_programs(1) - 1)
    def _finalize():
        y = _layer_norm(acc_ref[...], g_ref[...].astype(jnp.float32),
                        beta_ref[...].astype(jnp.float32))
        o_ref[...] = y.astype(o_ref.dtype)


# --------------------------------------------------------------------------- #
# Tiling / VMEM helpers
# --------------------------------------------------------------------------- #
def _round_up(a, b):
    return -(-a // b) * b


def _pick_divisor_tile(total, request, align):
    """Largest multiple of `align` that divides `total` and is <= request;
    falls back to the full extent (always divides, always a legal block dim)."""
    if total <= request:
        return total
    t = (request // align) * align
    while t >= align:
        if total % t == 0:
            return t
        t -= align
    return total


def _vmem_budget_bytes():
    """~85% of per-core physical VMEM (128 MiB on v5e/v6e, 64 MiB on v7x);
    conservative 64 MiB fallback when the query is unavailable."""
    cap = None
    try:
        cap = getattr(pltpu.get_tpu_info(), "vmem_capacity_bytes", None)
    except Exception:
        cap = None
    if not cap:
        cap = 64 << 20
    return int(cap) * 85 // 100


# --------------------------------------------------------------------------- #
# Wrapper
# --------------------------------------------------------------------------- #
@partial(jax.jit, static_argnames=("tm", "tc", "force_stream"))
def deberta_v2_ffn(x, w1, b1, w2, b2, gamma, beta, *, tm=512, tc=2048,
                   force_stream=False):
    """Fused DebertaV2FFN forward.
    x: [B, S, H]; w1: [H, I]; b1: [1, I]; w2: [I, H]; b2/gamma/beta: [1, H].
    Weights are stored [in, out] (transposed from nn.Linear's [out, in])."""
    B, S, H = x.shape
    I = w1.shape[1]
    M = B * S

    act_b = x.dtype.itemsize
    w_b = w1.dtype.itemsize
    row_align = 16 if act_b == 2 else 8

    def _nbytes(a):
        return a.size * a.dtype.itemsize

    params_bytes = sum(_nbytes(a) for a in (w1, b1, w2, b2, gamma, beta))
    budget = _vmem_budget_bytes()

    # Row tile: never fall back to a full-M block; pad rows up to the tile.
    tm_base = min(tm, _round_up(M, row_align))
    tm_base = max(row_align, (tm_base // row_align) * row_align)

    def resident_est(t):
        io = 2 * 2 * t * H * act_b            # double-buffered x and out tiles
        h_tmp = t * I * (4 + w_b)             # f32 intermediate + cast for 2nd matmul
        y_tmp = 3 * t * H * 4                 # f32 residual / LN temporaries
        return params_bytes + io + h_tmp + y_tmp

    # Prefer fully VMEM-resident weights: W1/W2 DMA'd from HBM exactly once.
    resident_tm = None
    if not force_stream:
        t = tm_base
        while True:
            if resident_est(t) <= budget:
                resident_tm = t
                break
            if t <= max(256, row_align):
                break
            nxt = max(row_align, ((t // 2) // row_align) * row_align)
            if nxt >= t:
                break
            t = nxt

    x2d = x.reshape(M, H)

    if resident_tm is not None:
        # ---------------- resident-weight path ---------------- #
        tm_eff = resident_tm
        Mp = _round_up(M, tm_eff)
        if Mp != M:
            x2d = jnp.pad(x2d, ((0, Mp - M), (0, 0)))
        nm = Mp // tm_eff
        vmem_limit = int(min(max(resident_est(tm_eff) * 5 // 4, 32 << 20), budget))

        out = pl.pallas_call(
            _ffn_resident_kernel,
            out_shape=jax.ShapeDtypeStruct((Mp, H), x.dtype),
            grid_spec=pltpu.PrefetchScalarGridSpec(
                num_scalar_prefetch=0,
                grid=(nm,),                                          # rows only
                in_specs=[
                    pl.BlockSpec((tm_eff, H), lambda i: (i, 0)),         # x rows
                    pl.BlockSpec(memory_space=pltpu.MemorySpace.VMEM),   # W1 resident
                    pl.BlockSpec(memory_space=pltpu.MemorySpace.VMEM),   # b1
                    pl.BlockSpec(memory_space=pltpu.MemorySpace.VMEM),   # W2 resident
                    pl.BlockSpec(memory_space=pltpu.MemorySpace.VMEM),   # b2
                    pl.BlockSpec(memory_space=pltpu.MemorySpace.VMEM),   # LN gamma
                    pl.BlockSpec(memory_space=pltpu.MemorySpace.VMEM),   # LN beta
                ],
                out_specs=pl.BlockSpec((tm_eff, H), lambda i: (i, 0)),
            ),
            compiler_params=pltpu.CompilerParams(
                dimension_semantics=("parallel",),
                vmem_limit_bytes=vmem_limit,
            ),
        )(x2d, w1, b1, w2, b2, gamma, beta)
    else:
        # ---------------- streaming (I-chunked) fallback ---------------- #
        tm_eff = tm_base
        tc_eff = _pick_divisor_tile(I, tc, 128)

        def stream_est(t, c):
            e = 2 * t * H * act_b                        # x tile (double-buffered)
            e += 2 * ((H * c + c) * w_b)                 # W1 chunk + b1 chunk
            e += 2 * (c * H * w_b + _nbytes(b2))         # W2 chunk + b2
            e += 2 * (_nbytes(gamma) + _nbytes(beta))    # LN params
            e += 2 * t * H * act_b                       # out tile
            e += t * H * 4                               # f32 accumulator scratch
            e += t * c * (4 + w_b)                       # f32 h + cast for 2nd matmul
            return e

        # Shrink tc, then tm, until the estimate fits the budget (never clamp
        # vmem_limit_bytes below the actual requirement).
        while stream_est(tm_eff, tc_eff) > budget and tc_eff > 128:
            nxt = _pick_divisor_tile(I, tc_eff // 2, 128)
            if nxt >= tc_eff:
                break
            tc_eff = nxt
        while stream_est(tm_eff, tc_eff) > budget and tm_eff > row_align:
            nxt = max(row_align, ((tm_eff // 2) // row_align) * row_align)
            if nxt >= tm_eff:
                break
            tm_eff = nxt

        Mp = _round_up(M, tm_eff)
        if Mp != M:
            x2d = jnp.pad(x2d, ((0, Mp - M), (0, 0)))
        nm, nk = Mp // tm_eff, I // tc_eff
        vmem_limit = int(min(max(stream_est(tm_eff, tc_eff) * 5 // 4, 32 << 20),
                             budget))

        out = pl.pallas_call(
            _ffn_stream_kernel,
            out_shape=jax.ShapeDtypeStruct((Mp, H), x.dtype),
            grid_spec=pltpu.PrefetchScalarGridSpec(
                num_scalar_prefetch=0,
                grid=(nm, nk),                           # reduction axis last
                in_specs=[
                    pl.BlockSpec((tm_eff, H), lambda i, k: (i, 0)),   # x (resident over k)
                    pl.BlockSpec((H, tc_eff), lambda i, k: (0, k)),   # W1 chunk
                    pl.BlockSpec((1, tc_eff), lambda i, k: (0, k)),   # b1 chunk
                    pl.BlockSpec((tc_eff, H), lambda i, k: (k, 0)),   # W2 chunk
                    pl.BlockSpec((1, H), lambda i, k: (0, 0)),        # b2
                    pl.BlockSpec((1, H), lambda i, k: (0, 0)),        # LN gamma
                    pl.BlockSpec((1, H), lambda i, k: (0, 0)),        # LN beta
                ],
                out_specs=pl.BlockSpec((tm_eff, H), lambda i, k: (i, 0)),
                scratch_shapes=[pltpu.VMEM((tm_eff, H), jnp.float32)],
            ),
            compiler_params=pltpu.CompilerParams(
                dimension_semantics=("parallel", "arbitrary"),
                vmem_limit_bytes=vmem_limit,
            ),
        )(x2d, w1, b1, w2, b2, gamma, beta)

    return out[:M].reshape(B, S, H)


# --------------------------------------------------------------------------- #
# Reference + self-test
# --------------------------------------------------------------------------- #
def _reference(x, w1, b1, w2, b2, gamma, beta):
    h = jnp.einsum("bsh,hi->bsi", x, w1) + b1[0]
    h = 0.5 * h * (1.0 + lax.erf(h / math.sqrt(2.0)))   # exact erf GELU
    y = jnp.einsum("bsi,ih->bsh", h, w2) + b2[0]
    y = y + x
    mean = jnp.mean(y, axis=-1, keepdims=True)
    var = jnp.mean(jnp.square(y - mean), axis=-1, keepdims=True)
    y = (y - mean) * lax.rsqrt(var + LAYER_NORM_EPS)
    return y * gamma[0] + beta[0]


if __name__ == "__main__":
    B, S, H, I = 2, 8, 32, 64  # batch, seq, hidden_size, intermediate_size

    key = jax.random.PRNGKey(0)
    kx, k1, k2 = jax.random.split(key, 3)

    x = jax.random.normal(kx, (B, S, H), dtype=jnp.float32)

    # Deterministic synthetic parameters (no checkpoint load).
    w1 = jax.random.normal(k1, (H, I), dtype=jnp.float32) * 0.02
    b1 = jnp.zeros((1, I), dtype=jnp.float32)
    w2 = jax.random.normal(k2, (I, H), dtype=jnp.float32) * 0.02
    b2 = jnp.zeros((1, H), dtype=jnp.float32)
    gamma = jnp.ones((1, H), dtype=jnp.float32)
    beta = jnp.zeros((1, H), dtype=jnp.float32)

    ref = _reference(x, w1, b1, w2, b2, gamma, beta)

    # Weight-resident path (used whenever W1/W2 fit the VMEM budget).
    out = jax.block_until_ready(deberta_v2_ffn(x, w1, b1, w2, b2, gamma, beta))
    assert jnp.allclose(out, ref, atol=2e-5, rtol=2e-5), "resident path mismatch"

    # Streaming (I-chunked) fallback path, exercised explicitly.
    out_s = jax.block_until_ready(
        deberta_v2_ffn(x, w1, b1, w2, b2, gamma, beta, force_stream=True))
    assert jnp.allclose(out_s, ref, atol=2e-5, rtol=2e-5), "streaming path mismatch"

    print("KERNEL_OK")
</pallas_src>

<mosaic_0001>
module attributes {stable_mosaic.version = 11 : i64} {
  func.func @_ffn_resident_kernel(%arg0: i32, %arg1: memref<16x32xf32, #tpu.memory_space<vmem>>, %arg2: memref<32x64xf32, #tpu.memory_space<vmem>>, %arg3: memref<1x64xf32, #tpu.memory_space<vmem>>, %arg4: memref<64x32xf32, #tpu.memory_space<vmem>>, %arg5: memref<1x32xf32, #tpu.memory_space<vmem>>, %arg6: memref<1x32xf32, #tpu.memory_space<vmem>>, %arg7: memref<1x32xf32, #tpu.memory_space<vmem>>, %arg8: memref<16x32xf32, #tpu.memory_space<vmem>>) attributes {dimension_semantics = [#tpu.dimension_semantics<parallel>], iteration_bounds = array<i64: 1>, scalar_prefetch = 0 : i64, scratch_operands = 0 : i64, tpu.core_type = #tpu.core_type<tc>, window_params = [{transform_indices = @transform_0, window_bounds = array<i64: 16, 32>}, {pipeline_mode = #tpu.pipeline_mode<synchronous>, transform_indices = @transform_1, window_bounds = array<i64: 32, 64>}, {pipeline_mode = #tpu.pipeline_mode<synchronous>, transform_indices = @transform_2, window_bounds = array<i64: 1, 64>}, {pipeline_mode = #tpu.pipeline_mode<synchronous>, transform_indices = @transform_3, window_bounds = array<i64: 64, 32>}, {pipeline_mode = #tpu.pipeline_mode<synchronous>, transform_indices = @transform_4, window_bounds = array<i64: 1, 32>}, {pipeline_mode = #tpu.pipeline_mode<synchronous>, transform_indices = @transform_5, window_bounds = array<i64: 1, 32>}, {pipeline_mode = #tpu.pipeline_mode<synchronous>, transform_indices = @transform_6, window_bounds = array<i64: 1, 32>}, {transform_indices = @transform_7, window_bounds = array<i64: 16, 32>}]} {
    %c0 = arith.constant 0 : index
    %c0_0 = arith.constant 0 : index
    %0 = vector.load %arg1[%c0, %c0_0] : memref<16x32xf32, #tpu.memory_space<vmem>>, vector<16x32xf32>
    %c0_1 = arith.constant 0 : index
    %c0_2 = arith.constant 0 : index
    %1 = vector.load %arg2[%c0_1, %c0_2] : memref<32x64xf32, #tpu.memory_space<vmem>>, vector<32x64xf32>
    %cst = arith.constant dense<0.000000e+00> : vector<16x64xf32>
    %2 = tpu.matmul %0, %1, %cst {dimension_numbers = #tpu.dot_dimension_numbers<[1], [0], [0], [1], [0, 0, 1, 1], [], []>} : vector<16x32xf32>, vector<32x64xf32>, vector<16x64xf32> -> vector<16x64xf32>
    %c0_3 = arith.constant 0 : index
    %c0_4 = arith.constant 0 : index
    %3 = vector.load %arg3[%c0_3, %c0_4] : memref<1x64xf32, #tpu.memory_space<vmem>>, vector<1x64xf32>
    %4 = vector.broadcast %3 : vector<1x64xf32> to vector<16x64xf32>
    %5 = arith.addf %2, %4 : vector<16x64xf32>
    %cst_5 = arith.constant 5.000000e-01 : f32
    %6 = vector.broadcast %cst_5 : f32 to vector<16x64xf32>
    %7 = arith.mulf %6, %5 : vector<16x64xf32>
    %cst_6 = arith.constant 0.707106769 : f32
    %8 = vector.broadcast %cst_6 : f32 to vector<16x64xf32>
    %9 = arith.mulf %5, %8 : vector<16x64xf32>
    %10 = math.absf %9 : vector<16x64xf32>
    %cst_7 = arith.constant 0.327591091 : f32
    %11 = vector.broadcast %cst_7 : f32 to vector<16x64xf32>
    %12 = arith.mulf %11, %10 : vector<16x64xf32>
    %cst_8 = arith.constant 1.000000e+00 : f32
    %13 = vector.broadcast %cst_8 : f32 to vector<16x64xf32>
    %14 = arith.addf %13, %12 : vector<16x64xf32>
    %cst_9 = arith.constant 1.000000e+00 : f32
    %15 = vector.broadcast %cst_9 : f32 to vector<16x64xf32>
    %16 = arith.divf %15, %14 : vector<16x64xf32>
    %cst_10 = arith.constant 1.06140542 : f32
    %17 = vector.broadcast %cst_10 : f32 to vector<16x64xf32>
    %18 = arith.mulf %17, %16 : vector<16x64xf32>
    %cst_11 = arith.constant -1.45315206 : f32
    %19 = vector.broadcast %cst_11 : f32 to vector<16x64xf32>
    %20 = arith.addf %18, %19 : vector<16x64xf32>
    %21 = arith.mulf %20, %16 : vector<16x64xf32>
    %cst_12 = arith.constant 1.42141378 : f32
    %22 = vector.broadcast %cst_12 : f32 to vector<16x64xf32>
    %23 = arith.addf %21, %22 : vector<16x64xf32>
    %24 = arith.mulf %23, %16 : vector<16x64xf32>
    %cst_13 = arith.constant -0.284496725 : f32
    %25 = vector.broadcast %cst_13 : f32 to vector<16x64xf32>
    %26 = arith.addf %24, %25 : vector<16x64xf32>
    %27 = arith.mulf %26, %16 : vector<16x64xf32>
    %cst_14 = arith.constant 0.254829586 : f32
    %28 = vector.broadcast %cst_14 : f32 to vector<16x64xf32>
    %29 = arith.addf %27, %28 : vector<16x64xf32>
    %30 = arith.mulf %29, %16 : vector<16x64xf32>
    %cst_15 = arith.constant 0.000000e+00 : f32
    %31 = vector.broadcast %cst_15 : f32 to vector<16x64xf32>
    %32 = arith.subf %31, %10 : vector<16x64xf32>
    %33 = arith.mulf %32, %10 : vector<16x64xf32>
    %34 = math.exp %33 : vector<16x64xf32>
    %35 = arith.mulf %30, %34 : vector<16x64xf32>
    %cst_16 = arith.constant 1.000000e+00 : f32
    %36 = vector.broadcast %cst_16 : f32 to vector<16x64xf32>
    %37 = arith.subf %36, %35 : vector<16x64xf32>
    %cst_17 = arith.constant 0.000000e+00 : f32
    %38 = vector.broadcast %cst_17 : f32 to vector<16x64xf32>
    %39 = arith.cmpf olt, %9, %38 : vector<16x64xf32>
    %cst_18 = arith.constant 0.000000e+00 : f32
    %40 = vector.broadcast %cst_18 : f32 to vector<16x64xf32>
    %41 = arith.subf %40, %37 : vector<16x64xf32>
    %42 = arith.select %39, %41, %37 : vector<16x64xi1>, vector<16x64xf32>
    %cst_19 = arith.constant 1.000000e+00 : f32
    %43 = vector.broadcast %cst_19 : f32 to vector<16x64xf32>
    %44 = arith.addf %43, %42 : vector<16x64xf32>
    %45 = arith.mulf %7, %44 : vector<16x64xf32>
    %c0_20 = arith.constant 0 : index
    %c0_21 = arith.constant 0 : index
    %46 = vector.load %arg4[%c0_20, %c0_21] : memref<64x32xf32, #tpu.memory_space<vmem>>, vector<64x32xf32>
    %cst_22 = arith.constant dense<0.000000e+00> : vector<16x32xf32>
    %47 = tpu.matmul %45, %46, %cst_22 {dimension_numbers = #tpu.dot_dimension_numbers<[1], [0], [0], [1], [0, 0, 1, 1], [], []>} : vector<16x64xf32>, vector<64x32xf32>, vector<16x32xf32> -> vector<16x32xf32>
    %c0_23 = arith.constant 0 : index
    %c0_24 = arith.constant 0 : index
    %48 = vector.load %arg5[%c0_23, %c0_24] : memref<1x32xf32, #tpu.memory_space<vmem>>, vector<1x32xf32>
    %49 = vector.broadcast %48 : vector<1x32xf32> to vector<16x32xf32>
    %50 = arith.addf %47, %49 : vector<16x32xf32>
    %51 = arith.addf %50, %0 : vector<16x32xf32>
    %c0_25 = arith.constant 0 : index
    %c0_26 = arith.constant 0 : index
    %52 = vector.load %arg6[%c0_25, %c0_26] : memref<1x32xf32, #tpu.memory_space<vmem>>, vector<1x32xf32>
    %c0_27 = arith.constant 0 : index
    %c0_28 = arith.constant 0 : index
    %53 = vector.load %arg7[%c0_27, %c0_28] : memref<1x32xf32, #tpu.memory_space<vmem>>, vector<1x32xf32>
    %cst_29 = arith.constant dense<0.000000e+00> : vector<16xf32>
    %54 = vector.multi_reduction <add>, %51, %cst_29 [1] : vector<16x32xf32> to vector<16xf32>
    %55 = vector.shape_cast %54 : vector<16xf32> to vector<16x1xf32>
    %cst_30 = arith.constant 3.200000e+01 : f32
    %56 = vector.broadcast %cst_30 : f32 to vector<16x1xf32>
    %57 = arith.divf %55, %56 : vector<16x1xf32>
    %58 = vector.broadcast %57 : vector<16x1xf32> to vector<16x32xf32>
    %59 = arith.subf %51, %58 : vector<16x32xf32>
    %60 = arith.mulf %59, %59 : vector<16x32xf32>
    %cst_31 = arith.constant dense<0.000000e+00> : vector<16xf32>
    %61 = vector.multi_reduction <add>, %60, %cst_31 [1] : vector<16x32xf32> to vector<16xf32>
    %62 = vector.shape_cast %61 : vector<16xf32> to vector<16x1xf32>
    %cst_32 = arith.constant 3.200000e+01 : f32
    %63 = vector.broadcast %cst_32 : f32 to vector<16x1xf32>
    %64 = arith.divf %62, %63 : vector<16x1xf32>
    %cst_33 = arith.constant 1.000000e-07 : f32
    %65 = vector.broadcast %cst_33 : f32 to vector<16x1xf32>
    %66 = arith.addf %64, %65 : vector<16x1xf32>
    %67 = math.rsqrt %66 : vector<16x1xf32>
    %68 = vector.broadcast %67 : vector<16x1xf32> to vector<16x32xf32>
    %69 = arith.mulf %59, %68 : vector<16x32xf32>
    %70 = vector.broadcast %52 : vector<1x32xf32> to vector<16x32xf32>
    %71 = arith.mulf %69, %70 : vector<16x32xf32>
    %72 = vector.broadcast %53 : vector<1x32xf32> to vector<16x32xf32>
    %73 = arith.addf %71, %72 : vector<16x32xf32>
    %c0_34 = arith.constant 0 : index
    %c0_35 = arith.constant 0 : index
    %74 = vector.load %arg8[%c0_34, %c0_35] : memref<16x32xf32, #tpu.memory_space<vmem>>, vector<16x32xf32>
    tpu.vector_store %arg8[%c0_34, %c0_35], %73 {strides = array<i32>} : memref<16x32xf32, #tpu.memory_space<vmem>>, vector<16x32xf32>,
    return
  }
  func.func @transform_0(%arg0: i32) -> (i32, i32) {
    %c0_i32 = arith.constant 0 : i32
    %c0_i32_0 = arith.constant 0 : i32
    return %arg0, %c0_i32 : i32, i32
  }
  func.func @transform_1(%arg0: i32) -> (i32, i32) {
    %c0_i32 = arith.constant 0 : i32
    %c0_i32_0 = arith.constant 0 : i32
    %c0_i32_1 = arith.constant 0 : i32
    return %c0_i32, %c0_i32_0 : i32, i32
  }
  func.func @transform_2(%arg0: i32) -> (i32, i32) {
    %c0_i32 = arith.constant 0 : i32
    %c0_i32_0 = arith.constant 0 : i32
    %c0_i32_1 = arith.constant 0 : i32
    return %c0_i32, %c0_i32_0 : i32, i32
  }
  func.func @transform_3(%arg0: i32) -> (i32, i32) {
    %c0_i32 = arith.constant 0 : i32
    %c0_i32_0 = arith.constant 0 : i32
    %c0_i32_1 = arith.constant 0 : i32
    return %c0_i32, %c0_i32_0 : i32, i32
  }
  func.func @transform_4(%arg0: i32) -> (i32, i32) {
    %c0_i32 = arith.constant 0 : i32
    %c0_i32_0 = arith.constant 0 : i32
    %c0_i32_1 = arith.constant 0 : i32
    return %c0_i32, %c0_i32_0 : i32, i32
  }
  func.func @transform_5(%arg0: i32) -> (i32, i32) {
    %c0_i32 = arith.constant 0 : i32
    %c0_i32_0 = arith.constant 0 : i32
    %c0_i32_1 = arith.constant 0 : i32
    return %c0_i32, %c0_i32_0 : i32, i32
  }
  func.func @transform_6(%arg0: i32) -> (i32, i32) {
    %c0_i32 = arith.constant 0 : i32
    %c0_i32_0 = arith.constant 0 : i32
    %c0_i32_1 = arith.constant 0 : i32
    return %c0_i32, %c0_i32_0 : i32, i32
  }
  func.func @transform_7(%arg0: i32) -> (i32, i32) {
    %c0_i32 = arith.constant 0 : i32
    %c0_i32_0 = arith.constant 0 : i32
    return %arg0, %c0_i32 : i32, i32
  }
}

</mosaic_0001>

<bundles_post_ra>
// kernel: deberta_v2_ffn.1
= control target key start
LH: loop header
LB: loop body
LE: loop exit
PB: predicated region body
PF: predicated region fallthrough
CT: control target
= control target key end

     0   :  { %vm40_vm0 = vcmask 261120   ;;  %s580_s0 = inlined_call_operand.vmem [shape: f32[16,32], index: 0, kind: input, shape index: {}]   ;;  %s581_s1 = inlined_call_operand.vmem [shape: f32[32,64], index: 1, kind: input, shape index: {}]   ;;  %s582_s2 = inlined_call_operand.vmem [shape: f32[1,64], index: 2, kind: input, shape index: {}]   ;;  %s583_s3 = inlined_call_operand.vmem [shape: f32[64,32], index: 3, kind: input, shape index: {}]   ;;  %s584_s4 = inlined_call_operand.vmem [shape: f32[1,32], index: 4, kind: input, shape index: {}]   ;;  %s585_s5 = inlined_call_operand.vmem [shape: f32[1,32], index: 5, kind: input, shape index: {}]   ;;  %s586_s6 = inlined_call_operand.vmem [shape: f32[1,32], index: 6, kind: input, shape index: {}]   ;;  %s587_s7 = inlined_call_operand.hbm [shape: f32[16,32], index: 7, kind: output, shape index: {}]  }
   0x1   :  { %v29_v0 = vld [vmem:[%s581_s1] sm:$0xff]  ;;  %v30_v1 = vld [vmem:[%s581_s1 + $0x8] sm:$0xff]  ;;  %v31_v2 = vld [vmem:[%s581_s1 + $0x10] sm:$0xff] }
   0x2   :  { %v392_v3 = vpack.c.bf16 %v30_v1, %v29_v0  ;;  %v32_v4 = vld [vmem:[%s581_s1 + $0x18] sm:$0xff]  ;;  %v513_v5 = vld [vmem:[%s580_s0] sm:$0xff] }
   0x3   :  { %v396_v6 = vpack.c.bf16 %v32_v4, %v31_v2  ;;  %370 = vmatprep.mubr.msk.f32.mxu0 %vm40_vm0, %v513_v5 }
   0x4   :  { %12 = vsyncpa [#allocation3], 0  ;;  %393 = vmatprep.subr.bf16.mxu0 %v392_v3  ;;  %v520_v7 = vld [vmem:[%s580_s0 + $0x8] sm:$0xff]  ;;  %v176_v8 = vld [vmem:[%s583_s3] sm:$0xff]  ;;  %vm191_vm3 = vcmask 523264   ;;  %s455_s9 = smov [#allocation2]  }
   0x5   :  { %395 = vmatpush3.bf16.msra.mxu0 %v392_v3  ;;  %v177_v9 = vld [vmem:[%s583_s3 + $0x8] sm:$0xff]  ;;  %v178_v11 = vld [vmem:[%s583_s3 + $0x10] sm:$0xff]  ;;  %v179_v12 = vld [vmem:[%s583_s3 + $0x18] sm:$0xff]  ;;  %s327_s10 = sshll.u32 %s455_s9, 4  ;;  %s328_s10 = int_to_ptr.vmem [resolvable:$true] %s327_s10 }
   0x6   :  { %397 = vmatprep.subr.bf16.mxu0 %v396_v6  ;;  %v400_v10 = vpack.c.bf16 %v177_v9, %v176_v8  ;;  %v404_v13 = vpack.c.bf16 %v179_v12, %v178_v11  ;;  %v180_v14 = vld [vmem:[%s583_s3 + $0x20] sm:$0xff]  ;;  %v181_v15 = vld [vmem:[%s583_s3 + $0x28] sm:$0xff]  ;;  %v182_v17 = vld [vmem:[%s583_s3 + $0x30] sm:$0xff]  ;;  %s431_s11 = scalar_lea.vmem %s328_s10, 256  ;;  %p436_p1 = scmp.lt.s32.totalorder %s328_s10, %s328_s10 }
   0x7   :  { %v408_v16 = vpack.c.bf16 %v181_v15, %v180_v14  ;;  %v183_v18 = vld [vmem:[%s583_s3 + $0x38] sm:$0xff]  ;;  %v338_v20 = vld [vmem:[%s582_s2] ss:$0 sm:$0xff]  ;;  %p432_p0 = scmp.ne.s32.totalorder %s328_s10, %s431_s11  ;;  %p437_p2 = scmp.lt.s32.totalorder %s431_s11, %s431_s11 }
   0x8   :  { %401 = vmatprep.subr.bf16.mxu1 %v400_v10  ;;  %v412_v19 = vpack.c.bf16 %v183_v18, %v182_v17 }
   0x9   :  { %399 = vmatpush3.bf16.msra.mxu0 %v396_v6  ;;  %403 = vmatpush3.bf16.msra.mxu1 %v400_v10  ;;  %p438_p3 = por %p437_p2, %p436_p1 }
   0xa   :  { %405 = vmatprep.subr.bf16.mxu1 %v404_v13 }
   0xb   :  { %p439_p4 = pnand %p438_p3, %p432_p0 }
   0xc   :  { %371 = vmatmul.mubr.msk.f32.vlgmr.msra.gmra.mrb[0].mxu0 %vm40_vm0, %v520_v7 }
   0xd   :  { %407 = vmatpush3.bf16.msra.mxu1 %v404_v13  ;;  %v341_v13 = vld [vmem:[%s584_s4] ss:$0 sm:$0xff] }
   0xe   :  { %409 = vmatprep.subr.bf16.mxu1 %v408_v16 }
  0x11   :  { %411 = vmatpush3.bf16.msra.mxu1 %v408_v16 }
  0x12   :  { %413 = vmatprep.subr.bf16.mxu1 %v412_v19 }
  0x15   :  { %415 = vmatpush3.bf16.msra.mxu1 %v412_v19 }
  0xdf   :  { %v372_v21 = vpop.f32.mrb[0].mxu0 }
  0xe0   :  { %v119_v22 = vadd.f32 %v372_v21, %v338_v20  ;;  %v113_v23 = vpop.f32.mrb[1].mxu0 }
  0xe1   :  { %v114_v24 = vadd.f32 %v338_v20, %v113_v23 }
  0xe2   :  { %v125_v25 = vmul.f32 0.70710677, %v119_v22  ;;  %v123_v10 = vmul.f32 0.5, %v119_v22 }
  0xe3   :  { %v124_v26 = vmul.f32 0.70710677, %v114_v24  ;;  %v122_v8 = vmul.f32 0.5, %v114_v24 }
  0xe4   :  { %v127_v27 = vand.u32 2147483647, %v125_v25  ;;  %vm167_vm1 = vcmp.lt.f32.partialorder %v125_v25, 0.0 }
  0xe5   :  { %v126_v28 = vand.u32 2147483647, %v124_v26  ;;  %vm166_vm2 = vcmp.lt.f32.partialorder %v124_v26, 0.0 }
  0xe6   :  { %v129_v29 = vmul.f32 0.3275911, %v127_v27  ;;  %v155_v33 = vsub.f32 0.0, %v127_v27 }
  0xe7   :  { %v128_v30 = vmul.f32 0.3275911, %v126_v28  ;;  %v154_v34 = vsub.f32 0.0, %v126_v28 }
  0xe8   :  { %v131_v31 = vadd.f32 1.0, %v129_v29  ;;  %v157_v36 = vmul.f32 %v155_v33, %v127_v27 }
  0xe9   :  { %v130_v32 = vadd.f32 1.0, %v128_v30  ;;  %v156_v39 = vmul.f32 %v154_v34, %v126_v28 }
  0xea   :  { %419 = vrcp.f32 %v131_v31  ;;  %v160_v42 = vmul.f32 1.442695, %v157_v36 }
  0xeb   :  { %421 = vrcp.f32 %v130_v32  ;;  %v158_v45 = vmul.f32 1.442695, %v156_v39  ;;  %v345_v39 = vld [vmem:[%s586_s6] ss:$0 sm:$0xff] }
  0xec   :  { %423 = vpow2.f32 %v160_v42 }
  0xed   :  { %425 = vpow2.f32 %v158_v45 }
  0xf4   :  { %v420_v35 = vpop.eup %419 }
  0xf5   :  { %v422_v37 = vpop.eup %421  ;;  %v137_v38 = vmul.f32 1.0614054, %v420_v35 }
  0xf6   :  { %v136_v40 = vmul.f32 1.0614054, %v422_v37  ;;  %v424_v58 = vpop.eup %423 }
  0xf7   :  { %v139_v41 = vadd.f32 -1.4531521, %v137_v38  ;;  %v426_v60 = vpop.eup %425 }
  0xf8   :  { %v138_v43 = vadd.f32 -1.4531521, %v136_v40 }
  0xf9   :  { %v141_v44 = vmul.f32 %v420_v35, %v139_v41 }
  0xfa   :  { %v140_v46 = vmul.f32 %v422_v37, %v138_v43 }
  0xfb   :  { %v143_v47 = vadd.f32 1.4214138, %v141_v44 }
  0xfc   :  { %v142_v48 = vadd.f32 1.4214138, %v140_v46 }
  0xfd   :  { %v145_v49 = vmul.f32 %v420_v35, %v143_v47 }
  0xfe   :  { %v144_v50 = vmul.f32 %v422_v37, %v142_v48 }
  0xff   :  { %v147_v51 = vadd.f32 -0.28449672, %v145_v49 }
 0x100   :  { %v146_v52 = vadd.f32 -0.28449672, %v144_v50 }
 0x101   :  { %v149_v53 = vmul.f32 %v420_v35, %v147_v51 }
 0x102   :  { %v148_v54 = vmul.f32 %v422_v37, %v146_v52 }
 0x103   :  { %v151_v55 = vadd.f32 0.2548296, %v149_v53 }
 0x104   :  { %v150_v56 = vadd.f32 0.2548296, %v148_v54 }
 0x105   :  { %v153_v57 = vmul.f32 %v420_v35, %v151_v55 }
 0x106   :  { %v152_v59 = vmul.f32 %v422_v37, %v150_v56  ;;  %v344_v37 = vld [vmem:[%s585_s5] ss:$0 sm:$0xff] }
 0x107   :  { %v163_v61 = vmul.f32 %v424_v58, %v153_v57 }
 0x108   :  { %v162_v62 = vmul.f32 %v426_v60, %v152_v59 }
 0x109   :  { %v165_v63 = vsub.f32 1.0, %v163_v61 }
 0x10a   :  { %v164_v0 = vsub.f32 1.0, %v162_v62 }
 0x10b   :  { %v169_v1 = vsub.f32 0.0, %v165_v63 }
 0x10c   :  { %v168_v2 = vsub.f32 0.0, %v164_v0 }
 0x10d   :  { %v171_v3 = vsel %vm167_vm1, %v169_v1, %v165_v63 }
 0x10e   :  { %v173_v4 = vadd.f32 1.0, %v171_v3  ;;  %v170_v6 = vsel %vm166_vm2, %v168_v2, %v164_v0 }
 0x10f   :  { %v172_v9 = vadd.f32 1.0, %v170_v6 }
 0x110   :  { %v175_v12 = vmul.f32 %v173_v4, %v123_v10 }
 0x111   :  { %v174_v11 = vmul.f32 %v172_v9, %v122_v8 }
 0x113   :  { %389 = vmatprep.mubr.msk.f32.mxu1 %vm191_vm3, %v174_v11 }
 0x114   :  { %390 = vmatmul.mubr.msk.f32.vlgmr.msra.gmra.mrb[0].mxu1 %vm191_vm3, %v175_v12 }
 0x1e7   :  { %v391_v14 = vpop.f32.mrb[0].mxu1 }
 0x1e8   :  { %v264_v15 = vpop.f32.mrb[1].mxu1  ;;  %v270_v16 = vadd.f32 %v391_v14, %v341_v13 }
 0x1e9   :  { %v265_v17 = vadd.f32 %v341_v13, %v264_v15 }
 0x1ea   :  { %v274_v20 = vadd.f32 %v270_v16, %v520_v7 }
 0x1eb   :  { %v273_v18 = vadd.f32 %v265_v17, %v513_v5 }
 0x1ec   :  { %v280_v21 = vsel %vm40_vm0, %v274_v20, 0.0 }
 0x1ed   :  { %v277_v19 = vsel %vm40_vm0, %v273_v18, 0.0 }
 0x1ee   :  { %278 = vadd.xlane.f32.xlu0 %v277_v19 }
 0x1f2   :  { %281 = vadd.xlane.f32.xlu0 %v280_v21 }
 0x27b   :  { %v279_v22 = vpop.xlane.xlu0 %278 }
 0x27c   :  { %v284_v23 = vmul.f32 0.03125, %v279_v22 }
 0x27e   :  { %v286_v24 = vsub.f32 %v273_v18, %v284_v23 }
 0x27f   :  { %v282_v25 = vpop.xlane.xlu0 %281 }
 0x280   :  { %v285_v26 = vmul.f32 0.03125, %v282_v25  ;;  %v288_v27 = vmul.f32 %v286_v24, %v286_v24 }
 0x282   :  { %v287_v28 = vsub.f32 %v274_v20, %v285_v26  ;;  %v290_v29 = vsel %vm40_vm0, %v288_v27, 0.0 }
 0x283   :  { %291 = vadd.xlane.f32.xlu1 %v290_v29 }
 0x284   :  { %v289_v30 = vmul.f32 %v287_v28, %v287_v28 }
 0x286   :  { %v293_v5 = vsel %vm40_vm0, %v289_v30, 0.0 }
 0x287   :  { %294 = vadd.xlane.f32.xlu1 %v293_v5 }
 0x310   :  { %v292_v31 = vpop.xlane.xlu1 %291 }
 0x311   :  { %v296_v7 = vmul.f32 0.03125, %v292_v31 }
 0x313   :  { %v298_v32 = vadd.f32 1e-07, %v296_v7 }
 0x314   :  { %v295_v33 = vpop.xlane.xlu1 %294 }
 0x315   :  { %427 = vrsqrt.f32 %v298_v32  ;;  %v297_v34 = vmul.f32 0.03125, %v295_v33 }
 0x317   :  { %v299_v35 = vadd.f32 1e-07, %v297_v34 }
 0x319   :  { %429 = vrsqrt.f32 %v299_v35 }
 0x31f   :  { %v428_v36 = vpop.eup %427 }
 0x320   :  { %v302_v38 = vmul.f32 %v428_v36, %v286_v24 }
 0x322   :  { %v310_v40 = vmul.f32 %v344_v37, %v302_v38 }
 0x323   :  { %v430_v41 = vpop.eup %429 }
 0x324   :  { %v303_v42 = vmul.f32 %v430_v41, %v287_v28  ;;  %v318_v43 = vadd.f32 %v345_v39, %v310_v40 }
 0x326   :  { %v311_v44 = vmul.f32 %v344_v37, %v303_v42  ;;  %320 = vst.msk [vmem:[#allocation2] sm:$0xff] %vm40_vm0, %v318_v43 }
 0x328   :  { %v319_v45 = vadd.f32 %v345_v39, %v311_v44 }
 0x32a   :  { %321 = vst.msk [vmem:[#allocation2 + $0x8] sm:$0xff] %vm40_vm0, %v319_v45 }
 0x32b   :  { %442 = shalt.err (!%p439_p4)
}
 0x32c   :  { %s443_s12 = scalar_lea.hbm %s587_s7, 256 }
 0x32d   :  { %p444_p5 = scmp.ne.s32.totalorder %s587_s7, %s443_s12  ;;  %p447_p6 = scmp.lt.u32.totalorder %s443_s12, %s587_s7 }
 0x32f   :  { %p449_p7 = pnand %p447_p6, %p444_p5 }
 0x331   :  { %452 = shalt.err (!%p449_p7)
}
 0x332   :  { %s456_s16 = smov 128   ;;  %s457_s17 = smov 8  }
 0x333   :  { %333 = dma.vmem_to_hbm [thread:$0]  %s328_s10, 256, %s587_s7, [#allocation3], %s456_s16, %s456_s16, %s457_s17  }
 0x334   :  { %453 = dma.done.wait [#allocation3], 256  }
 0x335   :  { %454 = vsyncadd [#allocation3], 4294967040 }
 0x336   :  { %337 = vsyncpa [#allocation3], 1 }

</bundles_post_ra>
